<compile_context>
chip_gen: v7x
topology: tpu7x:2x2x1
jax: 0.10.0
libtpu: 0.0.40
codegen_flags: <defaults>
</compile_context>

<pallas_src>
import jax
import jax.numpy as jnp
from jax.experimental import pallas as pl
from jax.experimental.pallas import tpu as pltpu

# ----------------------------- configuration -----------------------------
B      = 2      # batch
S_ENC  = 8      # encoder sequence length
T_DEC  = 6      # decoder sequence length
V      = 32     # vocabulary size
E      = 16     # embedding dim
H      = 32     # hidden dim (encoder == decoder, 1 layer each)
HA     = 32     # attention feature dim
N_OOV  = 4      # max #OOV words (extended vocab = V + N_OOV)
EPS    = 1e-12
COVERAGE_LOSS_LAMBDA = 1.0
PAD_ID = 0

VMEM_SPEC = pl.BlockSpec(memory_space=pltpu.MemorySpace.VMEM)


# ---------------- standalone GeneratorProbability kernel (the spec module) ----
# Unit-test only: the fused training kernel below folds w_h/w_s into the vocab
# projection and keeps only the x.w_x lane-reduce, so this tiny call never sits
# on a production path.
def generator_probability_kernel(feat_ref, w_ref, b_ref, out_ref):
    # sigmoid(w_h(context) + w_s(hidden) + w_x(input)) as one lane-reduction over
    # the concatenated features (w_row = [w_h ; w_s ; w_x]).
    out_ref[...] = jax.nn.sigmoid(
        jnp.sum(feat_ref[...] * w_ref[...], axis=-1, keepdims=True) + b_ref[...])


def generator_probability(context, hidden, inp, wpg_row, bpg):
    feats = jnp.concatenate([context, hidden, inp], axis=-1)        # (B, 2H+E)
    return pl.pallas_call(
        generator_probability_kernel,
        out_shape=jax.ShapeDtypeStruct((context.shape[0], 1), jnp.float32),
        in_specs=[VMEM_SPEC] * 3,
        out_specs=VMEM_SPEC,
    )(feats, wpg_row, bpg)


# --------------------------- fused forward kernel -----------------------------
def fused_pointer_generator_kernel(
        # data
        emb_src_ref,    # (S*B, E)        time-major flattened encoder embeddings
        xdec_ref,       # (T-1, B, E)     teacher-forced decoder input embeddings
        tgt1h_ref,      # ((T-1)*B, V)    one-hot of in-vocab target (OOV -> zeros)
        match_ref,      # ((T-1)*B, S)    1[src_with_oov == target_with_oov]
        declen_ref,     # (B, 1)
        # weight slabs (f32; matmul operands cast to bf16 in-kernel, once)
        enc_gru_ref,    # (E+H+2, 3H)  rows [Wi (E) ; Wh (H) ; bi ; bh]
        xc_ref,         # (E+H+2, E)   rows [Wxc_emb ; Wxc_ctx ; bxc ; w_pg_x^T]
        dec_gru_ref,    # (E+H+1, 4H)  cols [r|z|n_in|n_h], rows [Wx ; Wh ; bias]
        attn_ref,       # (2H+3, HA)   rows [Wenc ; Wdec ; wcov ; battn ; vattn^T]
        out_w_ref,      # (2H+1, V+1)  cols [vocab | p_gen], rows [Wh ; Wctx ; bias]
        # output
        loss_ref):      # (1, 1)
    f32, bf16 = jnp.float32, jnp.bfloat16
    Tm1, Bk, Ek = xdec_ref.shape
    Sk = match_ref.shape[1]
    Hk = enc_gru_ref.shape[1] // 3
    Vk = tgt1h_ref.shape[1]

    # ---- split weight slabs once; cast MXU operands to bf16, biases stay f32 --
    wi_e = enc_gru_ref[0:Ek, :].astype(bf16)                 # (E, 3H)
    wh_e = enc_gru_ref[Ek:Ek + Hk, :].astype(bf16)           # (H, 3H)
    bi_e = enc_gru_ref[Ek + Hk:Ek + Hk + 1, :]               # (1, 3H)
    bh_e = enc_gru_ref[Ek + Hk + 1:Ek + Hk + 2, :]           # (1, 3H)

    wxc  = xc_ref[0:Ek + Hk, :].astype(bf16)                 # (E+H, E)
    bxc  = xc_ref[Ek + Hk:Ek + Hk + 1, :]                    # (1, E)
    wpgx = xc_ref[Ek + Hk + 1:Ek + Hk + 2, :]                # (1, E)

    w_gru_d = dec_gru_ref[0:Ek + Hk, :].astype(bf16)         # (E+H, 4H)
    b_gru_d = dec_gru_ref[Ek + Hk:Ek + Hk + 1, :]            # (1, 4H)

    wenc  = attn_ref[0:Hk, :].astype(bf16)                   # (H, HA)
    wdec  = attn_ref[Hk:2 * Hk, :].astype(bf16)              # (H, HA)
    wcov  = attn_ref[2 * Hk:2 * Hk + 1, :]                   # (1, HA)
    battn = attn_ref[2 * Hk + 1:2 * Hk + 2, :]               # (1, HA)
    vattn = attn_ref[2 * Hk + 2:2 * Hk + 3, :]               # (1, HA)

    wout = out_w_ref[0:2 * Hk, :].astype(bf16)               # (2H, V+1)
    bout = out_w_ref[2 * Hk:2 * Hk + 1, :]                   # (1, V+1)

    # ------------- encoder GRU: input gates batched over S, one push / step ----
    gi = jnp.dot(emb_src_ref[...].astype(bf16), wi_e,
                 preferred_element_type=f32) + bi_e          # (S*B, 3H)

    h = jnp.zeros((Bk, Hk), f32)
    enc_list = []
    for t in range(Sk):                                      # static unroll
        gh = jnp.dot(h.astype(bf16), wh_e, preferred_element_type=f32) + bh_e
        g = gi[t * Bk:(t + 1) * Bk, :]
        r = jax.nn.sigmoid(g[:, 0:Hk] + gh[:, 0:Hk])
        z = jax.nn.sigmoid(g[:, Hk:2 * Hk] + gh[:, Hk:2 * Hk])
        n = jnp.tanh(g[:, 2 * Hk:3 * Hk] + r * gh[:, 2 * Hk:3 * Hk])
        h = (1.0 - z) * n + z * h
        enc_list.append(h)

    enc = jnp.stack(enc_list, axis=1)                        # (B, S, H)
    # step-invariant attention features: one batched matmul, hoisted from decode;
    # the constant attention bias battn is folded in here once (not per step).
    feat_flat = jnp.dot(jnp.concatenate(enc_list, axis=0).astype(bf16), wenc,
                        preferred_element_type=f32)          # (S*B, HA)
    feat_enc = jnp.stack([feat_flat[t * Bk:(t + 1) * Bk, :] for t in range(Sk)],
                         axis=1) + battn                     # (B, S, HA)

    # ------------- decoder: only GRU + attention stay on the serial chain ------
    ctx = jnp.zeros((Bk, Hk), f32)
    cov = jnp.zeros((Bk, Sk), f32)
    xs, hcs, attns, covs = [], [], [], []

    for t in range(Tm1):                                     # static unroll
        emb = xdec_ref[t]                                    # (B, E)
        # x_t = W_xc [emb ; prev_ctx] + b                    (1 MXU push)
        x = jnp.dot(jnp.concatenate([emb, ctx], axis=-1).astype(bf16), wxc,
                    preferred_element_type=f32) + bxc
        # GRU cell: single 128-lane push [r | z | n_in | n_h] (1 MXU push)
        g = jnp.dot(jnp.concatenate([x, h], axis=-1).astype(bf16), w_gru_d,
                    preferred_element_type=f32) + b_gru_d
        r = jax.nn.sigmoid(g[:, 0:Hk])
        z = jax.nn.sigmoid(g[:, Hk:2 * Hk])
        n = jnp.tanh(g[:, 2 * Hk:3 * Hk] + r * g[:, 3 * Hk:4 * Hk])
        h = (1.0 - z) * n + z * h
        # coverage attention                                  (1 MXU push)
        feat_dec = jnp.dot(h.astype(bf16), wdec, preferred_element_type=f32)
        e = jnp.tanh(feat_enc + feat_dec[:, None, :] + cov[:, :, None] * wcov)
        scores = jnp.sum(e * vattn, axis=-1)                 # (B, S), lane reduce
        attn = jax.nn.softmax(scores, axis=-1)
        ctx = jnp.sum(attn[:, :, None] * enc, axis=1)        # (B, H)

        xs.append(x)
        hcs.append(jnp.concatenate([h, ctx], axis=-1))
        attns.append(attn)
        covs.append(cov)                                     # pre-update coverage
        cov = cov + attn

    # ------------- batched tail: everything step-independent, off the chain ----
    hc_flat   = jnp.concatenate(hcs, axis=0)                 # ((T-1)*B, 2H)
    x_flat    = jnp.concatenate(xs, axis=0)                  # ((T-1)*B, E)
    attn_flat = jnp.concatenate(attns, axis=0)               # ((T-1)*B, S)
    cov_flat  = jnp.concatenate(covs, axis=0)                # ((T-1)*B, S)

    # [h|ctx] @ [Wout | w_pg_hc]: vocab logits + p_gen(ctx,h) column, one push
    logits_ext = jnp.dot(hc_flat.astype(bf16), wout,
                         preferred_element_type=f32) + bout  # ((T-1)*B, V+1)
    p_gen = jax.nn.sigmoid(logits_ext[:, Vk:Vk + 1]
                           + jnp.sum(x_flat * wpgx, axis=-1, keepdims=True))
    p_vocab = jax.nn.softmax(logits_ext[:, 0:Vk], axis=-1)

    prob_gen  = jnp.sum(p_vocab * tgt1h_ref[...], axis=-1, keepdims=True)
    prob_copy = jnp.sum(attn_flat * match_ref[...], axis=-1, keepdims=True)
    prob = p_gen * prob_gen + (1.0 - p_gen) * prob_copy
    cov_loss = COVERAGE_LOSS_LAMBDA * jnp.sum(
        jnp.minimum(attn_flat, cov_flat), axis=-1, keepdims=True)
    step_loss = -jnp.log(prob + EPS) + cov_loss              # ((T-1)*B, 1)

    per_seq = step_loss[0:Bk, :]
    for t in range(1, Tm1):
        per_seq = per_seq + step_loss[t * Bk:(t + 1) * Bk, :]
    loss_ref[...] = jnp.sum(per_seq / declen_ref[...],
                            axis=0, keepdims=True) * (1.0 / Bk)


# ------------------------------- glue / wrapper --------------------------------
def _prepare_inputs(packed, src, src_with_oov, trg, trg_with_oov):
    Bk, S = src.shape
    Tm1 = trg.shape[1] - 1
    emb_src = jnp.transpose(packed["emb_enc"][src], (1, 0, 2)).reshape(S * Bk, E)
    xdec = jnp.transpose(packed["emb_dec"][trg[:, 1:]], (1, 0, 2))        # (T-1,B,E)
    tgt1h = jnp.transpose(jax.nn.one_hot(trg_with_oov[:, 1:], V, dtype=jnp.float32),
                          (1, 0, 2)).reshape(Tm1 * Bk, V)                 # ((T-1)*B,V)
    match = jnp.transpose(
        (src_with_oov[:, None, :] == trg_with_oov[:, 1:, None]).astype(jnp.float32),
        (1, 0, 2)).reshape(Tm1 * Bk, S)                                   # ((T-1)*B,S)
    # length normalization: number of non-pad target tokens minus 1
    dec_len = jnp.maximum(jnp.sum(trg != PAD_ID, axis=-1).astype(jnp.float32) - 1.0,
                          1.0)[:, None]                                   # (B, 1)
    return emb_src, xdec, tgt1h, match, dec_len


@jax.jit
def seq2seq_forward(packed, src, src_with_oov, trg, trg_with_oov):
    emb_src, xdec, tgt1h, match, dec_len = _prepare_inputs(
        packed, src, src_with_oov, trg, trg_with_oov)
    loss = pl.pallas_call(
        fused_pointer_generator_kernel,
        out_shape=jax.ShapeDtypeStruct((1, 1), jnp.float32),
        in_specs=[VMEM_SPEC] * 10,
        out_specs=VMEM_SPEC,
    )(emb_src, xdec, tgt1h, match, dec_len,
      packed["enc_gru"], packed["xc"], packed["dec_gru"], packed["attn"],
      packed["out"])
    return loss[0, 0]


# ------------------------------ parameters -------------------------------------
def init_params(key):
    names_shapes = [
        ("emb_enc", (V, E)),
        ("wi_e", (E, 3 * H)), ("wh_e", (H, 3 * H)), ("bi_e", (1, 3 * H)), ("bh_e", (1, 3 * H)),
        ("emb_dec", (V, E)),
        ("wxce", (E, E)), ("wxcc", (H, E)), ("bxc", (1, E)),
        ("wdi", (E, 3 * H)), ("wdh", (H, 3 * H)), ("bdi", (1, 3 * H)), ("bdh", (1, 3 * H)),
        ("wenc", (H, HA)), ("wdec", (H, HA)), ("wcov", (1, HA)), ("battn", (1, HA)),
        ("vattn", (HA, 1)),
        ("wpgc", (H, 1)), ("wpgh", (H, 1)), ("wpgx", (E, 1)), ("bpg", (1, 1)),
        ("wouth", (H, V)), ("woutc", (H, V)), ("bout", (1, V)),
    ]
    keys = jax.random.split(key, len(names_shapes))
    return {name: (0.1 * jax.random.normal(k, shape)).astype(jnp.float32)
            for (name, shape), k in zip(names_shapes, keys)}


def pack_params(raw):
    """Kernel-ready layout: a few weight slabs, biases appended as extra rows."""
    # encoder GRU slab: rows [Wi (E) ; Wh (H) ; bi ; bh], cols = gates [r|z|n]
    enc_gru = jnp.concatenate(
        [raw["wi_e"], raw["wh_e"], raw["bi_e"], raw["bh_e"]], axis=0)      # (E+H+2, 3H)
    # decoder input-combine + p_gen(x) slab: rows [Wxc_emb ; Wxc_ctx ; bxc ; w_pg_x^T]
    xc = jnp.concatenate(
        [raw["wxce"], raw["wxcc"], raw["bxc"], jnp.transpose(raw["wpgx"])], axis=0)
    # decoder GRU 4-gate slab: cols [r | z | n_in | n_h], rows [Wx (E) ; Wh (H) ; bias]
    zeros_e = jnp.zeros((E, H), jnp.float32)
    zeros_h = jnp.zeros((H, H), jnp.float32)
    w4 = jnp.concatenate([
        jnp.concatenate([raw["wdi"][:, 0:H], raw["wdi"][:, H:2 * H],
                         raw["wdi"][:, 2 * H:3 * H], zeros_e], axis=1),
        jnp.concatenate([raw["wdh"][:, 0:H], raw["wdh"][:, H:2 * H],
                         zeros_h, raw["wdh"][:, 2 * H:3 * H]], axis=1)], axis=0)
    b4 = jnp.concatenate([
        raw["bdi"][:, 0:H] + raw["bdh"][:, 0:H],
        raw["bdi"][:, H:2 * H] + raw["bdh"][:, H:2 * H],
        raw["bdi"][:, 2 * H:3 * H],
        raw["bdh"][:, 2 * H:3 * H]], axis=1)
    dec_gru = jnp.concatenate([w4, b4], axis=0)                            # (E+H+1, 4H)
    # attention slab: rows [Wenc (H) ; Wdec (H) ; wcov ; battn ; vattn^T]
    attn = jnp.concatenate(
        [raw["wenc"], raw["wdec"], raw["wcov"], raw["battn"],
         jnp.transpose(raw["vattn"])], axis=0)                             # (2H+3, HA)
    # vocab projection + folded GeneratorProbability(ctx,h) column: [vocab | p_gen]
    out = jnp.concatenate([
        jnp.concatenate([raw["wouth"], raw["wpgh"]], axis=1),
        jnp.concatenate([raw["woutc"], raw["wpgc"]], axis=1),
        jnp.concatenate([raw["bout"], raw["bpg"]], axis=1)], axis=0)       # (2H+1, V+1)
    return {
        "emb_enc": raw["emb_enc"], "emb_dec": raw["emb_dec"],
        "enc_gru": enc_gru, "xc": xc, "dec_gru": dec_gru,
        "attn": attn, "out": out,
        # standalone GeneratorProbability unit-test weights (row = [w_h ; w_s ; w_x])
        "wpg_row": jnp.transpose(jnp.concatenate(
            [raw["wpgc"], raw["wpgh"], raw["wpgx"]], axis=0)),             # (1, 2H+E)
        "bpg": raw["bpg"],
    }


# ----------------------- pure-jnp reference (correctness) ----------------------
def reference_forward(raw, src, src_with_oov, trg, trg_with_oov,
                      eps=EPS, lam=COVERAGE_LOSS_LAMBDA):
    Bk, S = src.shape
    T = trg.shape[1]

    def gru(x, h, wi, wh, bi, bh):
        gi = x @ wi + bi
        gh = h @ wh + bh
        r = jax.nn.sigmoid(gi[:, 0:H] + gh[:, 0:H])
        z = jax.nn.sigmoid(gi[:, H:2 * H] + gh[:, H:2 * H])
        n = jnp.tanh(gi[:, 2 * H:] + r * gh[:, 2 * H:])
        return (1.0 - z) * n + z * h

    emb_src = raw["emb_enc"][src]
    h = jnp.zeros((Bk, H), jnp.float32)
    enc_list = []
    for t in range(S):
        h = gru(emb_src[:, t, :], h, raw["wi_e"], raw["wh_e"], raw["bi_e"], raw["bh_e"])
        enc_list.append(h)
    enc = jnp.stack(enc_list, axis=1)                                    # (B, S, H)

    ctx = jnp.zeros((Bk, H), jnp.float32)
    cov = jnp.zeros((Bk, S), jnp.float32)
    dec_lens = jnp.maximum(jnp.sum(trg != PAD_ID, axis=-1).astype(jnp.float32) - 1.0, 1.0)
    feat_enc = enc @ raw["wenc"]

    loss_sum = jnp.zeros((Bk,), jnp.float32)
    for t in range(1, T):
        emb = raw["emb_dec"][trg[:, t]]
        x = emb @ raw["wxce"] + ctx @ raw["wxcc"] + raw["bxc"]
        h = gru(x, h, raw["wdi"], raw["wdh"], raw["bdi"], raw["bdh"])
        feat_dec = h @ raw["wdec"]
        e = jnp.tanh(feat_enc + feat_dec[:, None, :] + cov[:, :, None] * raw["wcov"]
                     + raw["battn"])
        scores = (e @ raw["vattn"])[:, :, 0]
        attn = jax.nn.softmax(scores, axis=-1)
        ctx = jnp.sum(attn[:, :, None] * enc, axis=1)
        p_gen = jax.nn.sigmoid(ctx @ raw["wpgc"] + h @ raw["wpgh"]
                               + x @ raw["wpgx"] + raw["bpg"])
        p_vocab = jax.nn.softmax(h @ raw["wouth"] + ctx @ raw["woutc"] + raw["bout"], axis=-1)
        tgt = trg_with_oov[:, t]
        tgt1h = jax.nn.one_hot(tgt, V, dtype=jnp.float32)
        match = (src_with_oov == tgt[:, None]).astype(jnp.float32)
        prob_gen = jnp.sum(p_vocab * tgt1h, axis=-1, keepdims=True)
        prob_copy = jnp.sum(attn * match, axis=-1, keepdims=True)
        prob = p_gen * prob_gen + (1.0 - p_gen) * prob_copy
        step_loss = (-jnp.log(prob[:, 0] + eps)
                     + lam * jnp.sum(jnp.minimum(attn, cov), axis=-1))
        loss_sum = loss_sum + step_loss
        cov = cov + attn
    return jnp.mean(loss_sum / dec_lens)


# ----------------------------------- main ---------------------------------------
if __name__ == "__main__":
    key = jax.random.PRNGKey(0)
    kp, k1, k2, k3, k4, kc, kh, kx = jax.random.split(key, 8)

    raw = init_params(kp)
    packed = pack_params(raw)

    src          = jax.random.randint(k1, (B, S_ENC), 1, V)
    src_with_oov = jax.random.randint(k2, (B, S_ENC), 1, V + N_OOV)
    trg          = jax.random.randint(k3, (B, T_DEC), 1, V)
    trg_with_oov = jax.random.randint(k4, (B, T_DEC), 1, V + N_OOV)

    # --- standalone GeneratorProbability kernel (the spec module, unit test) --
    ctx_d = jax.random.normal(kc, (B, H), jnp.float32)
    hid_d = jax.random.normal(kh, (B, H), jnp.float32)
    inp_d = jax.random.normal(kx, (B, E), jnp.float32)
    gp = generator_probability(ctx_d, hid_d, inp_d, packed["wpg_row"], packed["bpg"])
    gp_ref = jax.nn.sigmoid(ctx_d @ raw["wpgc"] + hid_d @ raw["wpgh"]
                            + inp_d @ raw["wpgx"] + raw["bpg"])
    jax.block_until_ready(gp)
    assert jnp.allclose(gp, gp_ref, rtol=1e-4, atol=1e-5), "GeneratorProbability mismatch"

    # --- fused pointer-generator training forward (one pallas_call) ----------
    loss = seq2seq_forward(packed, src, src_with_oov, trg, trg_with_oov)
    jax.block_until_ready(loss)
    loss_ref = reference_forward(raw, src, src_with_oov, trg, trg_with_oov)

    assert loss.shape == () and bool(jnp.isfinite(loss))
    # bf16 MXU operands (f32 accumulation) vs. an all-f32 reference: allow a few
    # percent on the scalar loss.
    assert jnp.allclose(loss, loss_ref, rtol=5e-2, atol=5e-3), (float(loss), float(loss_ref))
    print("KERNEL_OK")
</pallas_src>

<mosaic_0001>
module attributes {stable_mosaic.version = 11 : i64} {
  func.func @generator_probability_kernel(%arg0: memref<2x80xf32, #tpu.memory_space<vmem>>, %arg1: memref<1x80xf32, #tpu.memory_space<vmem>>, %arg2: memref<1x1xf32, #tpu.memory_space<vmem>>, %arg3: memref<2x1xf32, #tpu.memory_space<vmem>>) attributes {dimension_semantics = [], scalar_prefetch = 0 : i64, scratch_operands = 0 : i64, tpu.core_type = #tpu.core_type<tc>} {
    %c0 = arith.constant 0 : index
    %c0_0 = arith.constant 0 : index
    %0 = vector.load %arg0[%c0, %c0_0] : memref<2x80xf32, #tpu.memory_space<vmem>>, vector<2x80xf32>
    %c0_1 = arith.constant 0 : index
    %c0_2 = arith.constant 0 : index
    %1 = vector.load %arg1[%c0_1, %c0_2] : memref<1x80xf32, #tpu.memory_space<vmem>>, vector<1x80xf32>
    %2 = vector.broadcast %1 : vector<1x80xf32> to vector<2x80xf32>
    %3 = arith.mulf %0, %2 : vector<2x80xf32>
    %cst = arith.constant dense<0.000000e+00> : vector<2xf32>
    %4 = vector.multi_reduction <add>, %3, %cst [1] : vector<2x80xf32> to vector<2xf32>
    %5 = vector.shape_cast %4 : vector<2xf32> to vector<2x1xf32>
    %c0_3 = arith.constant 0 : index
    %c0_4 = arith.constant 0 : index
    %6 = vector.load %arg2[%c0_3, %c0_4] : memref<1x1xf32, #tpu.memory_space<vmem>>, vector<1x1xf32>
    %7 = vector.broadcast %6 : vector<1x1xf32> to vector<2x1xf32>
    %8 = arith.addf %5, %7 : vector<2x1xf32>
    %9 = arith.negf %8 : vector<2x1xf32>
    %10 = math.exp %9 : vector<2x1xf32>
    %cst_5 = arith.constant 1.000000e+00 : f32
    %11 = vector.broadcast %cst_5 : f32 to vector<2x1xf32>
    %12 = arith.addf %11, %10 : vector<2x1xf32>
    %13 = arith.divf %11, %12 : vector<2x1xf32>
    %c0_6 = arith.constant 0 : index
    %c0_7 = arith.constant 0 : index
    %14 = vector.load %arg3[%c0_6, %c0_7] : memref<2x1xf32, #tpu.memory_space<vmem>>, vector<2x1xf32>
    tpu.vector_store %arg3[%c0_6, %c0_7], %13 {strides = array<i32>} : memref<2x1xf32, #tpu.memory_space<vmem>>, vector<2x1xf32>,
    return
  }
}

</mosaic_0001>

<bundles_post_ra>
// kernel: tpu_custom_call.1
= control target key start
LH: loop header
LB: loop body
LE: loop exit
PB: predicated region body
PF: predicated region fallthrough
CT: control target
= control target key end

     0   :  { %vm25_vm0 = vcmask 648192   ;;  %vm43_vm1 = vcmask 1024   ;;  %s88_s0 = inlined_call_operand.vmem [shape: f32[2,80], index: 0, kind: input, shape index: {}]   ;;  %s89_s1 = inlined_call_operand.vmem [shape: f32[1,80], index: 1, kind: input, shape index: {}]   ;;  %s90_s2 = inlined_call_operand.<no memory space> [shape: f32[1,1], index: 2, kind: input, shape index: {}]   ;;  %s91_s3 = inlined_call_operand.vmem [shape: f32[2,1], index: 3, kind: output, shape index: {}]  }
   0x1   :  { %v16_v0 = vld [vmem:[%s88_s0] sm:$0x3]  ;;  %v8_v2 = vstv %s90_s2 }
   0x2   :  { %v49_v1 = vld [vmem:[%s89_s1] ss:$0 sm:$0xff]  ;;  %9 = vst [vmem:[#allocation2] sm:$0x1] %v8_v2 }
   0x3   :  { %v24_v3 = vmul.f32 %v49_v1, %v16_v0 }
   0x5   :  { %v26_v4 = vsel %vm25_vm0, %v24_v3, 0.0 }
   0x6   :  { %27 = vadd.xlane.f32.xlu0 %v26_v4 }
   0x9   :  { %v50_v5 = vld [vmem:[#allocation2] ss:$0 sm:$0xff] }
  0x93   :  { %v28_v6 = vpop.xlane.xlu0 %27 }
  0x94   :  { %v36_v7 = vadd.f32 %v50_v5, %v28_v6 }
  0x96   :  { %v51_v8 = vmul.f32 -1.442695, %v36_v7 }
  0x98   :  { %52 = vpow2.f32 %v51_v8 }
  0xa2   :  { %v53_v9 = vpop.eup %52 }
  0xa3   :  { %v40_v10 = vadd.f32 1.0, %v53_v9 }
  0xa5   :  { %54 = vrcp.f32 %v40_v10 }
  0xaf   :  { %v55_v11 = vpop.eup %54 }
  0xb0   :  { %44 = vst.msk [vmem:[%s91_s3] sm:$0x3] %vm43_vm1, %v55_v11 }

</bundles_post_ra>
